<compile_context>
chip_gen: v6e
topology: v6e:2x2x1
jax: 0.10.0
libtpu: 0.0.40
codegen_flags: <defaults>
</compile_context>

<pallas_src>
from functools import partial

import jax
import jax.numpy as jnp
from jax.experimental import pallas as pl
from jax.experimental.pallas import tpu as pltpu

D_IN, D_HID, D_OUT = 1024, 256, 500
D_OUT_PAD = 512          # next multiple of 128 -> lane-dense output stores
BN_EPS = 1e-5
PATCH = 8


# ----------------------------- Pallas kernel ------------------------------ #
def clip_mlp_kernel(x_ref, w1_ref, b1_ref, w2_ref, b2_ref, o_ref):
    # x: (TM, 1024) bf16, w1: (1024, 256) bf16 (BN pre-folded), b1: (1, 256) f32
    # w2: (256, 512) bf16 (zero-padded cols 500..511), b2: (1, 512) f32
    x = x_ref[...]
    h = jnp.dot(x, w1_ref[...], preferred_element_type=jnp.float32)
    h = h + b1_ref[...]                       # Linear bias + folded BatchNorm
    h = jnp.maximum(h, 0.0)                   # ReLU; Dropout is identity (eval)
    y = jnp.dot(h.astype(w2_ref.dtype), w2_ref[...],
                preferred_element_type=jnp.float32)
    y = y + b2_ref[...]
    o_ref[...] = y.astype(o_ref.dtype)


def clip_mlp_head(x, p, *, tm=128):
    """x: [B, 1024] float32 -> [B, 500] float32 (fused MLP head in Pallas)."""
    B = x.shape[0]

    # --- host-side parameter prep: fold BN, pad output dim, cast to bf16 ---
    inv = p["gamma"] * jax.lax.rsqrt(p["running_var"] + BN_EPS)        # (1, 256)
    w1f = (p["w1"] * inv).astype(jnp.bfloat16)                         # (1024, 256)
    b1f = (p["b1"] - p["running_mean"]) * inv + p["beta"]              # (1, 256) f32
    w2p = jnp.pad(p["w2"], ((0, 0), (0, D_OUT_PAD - D_OUT))).astype(jnp.bfloat16)
    b2p = jnp.pad(p["b2"], ((0, 0), (0, D_OUT_PAD - D_OUT)))           # (1, 512) f32

    # --- batch padding / tile-size choice (TM multiple of 8, capped at 128) ---
    bp = ((B + 7) // 8) * 8
    tm = min(tm, bp)
    bp = ((bp + tm - 1) // tm) * tm
    xb = x.astype(jnp.bfloat16)
    if bp != B:
        xb = jnp.pad(xb, ((0, bp - B), (0, 0)))

    out = pl.pallas_call(
        clip_mlp_kernel,
        out_shape=jax.ShapeDtypeStruct((bp, D_OUT_PAD), jnp.float32),
        grid=(bp // tm,),
        in_specs=[
            pl.BlockSpec((tm, D_IN), lambda i: (i, 0)),            # activations
            pl.BlockSpec((D_IN, D_HID), lambda i: (0, 0)),         # VMEM-resident
            pl.BlockSpec((1, D_HID), lambda i: (0, 0)),            # VMEM-resident
            pl.BlockSpec((D_HID, D_OUT_PAD), lambda i: (0, 0)),    # VMEM-resident
            pl.BlockSpec((1, D_OUT_PAD), lambda i: (0, 0)),        # VMEM-resident
        ],
        out_specs=pl.BlockSpec((tm, D_OUT_PAD), lambda i: (i, 0)),
        compiler_params=pltpu.CompilerParams(
            dimension_semantics=("parallel",)),                    # 2 TCs on v7x
    )(xb, w1f, b1f, w2p, b2p)
    return out[:B, :D_OUT]


# ------------------------ frozen image-encoder stub ------------------------ #
def stub_image_encoder(images, ep):
    # TODO(synk): the real CLIP vision transformer is an external, frozen module
    # passed into Clip.__init__; here it is a deterministic patch-embedding stub
    # producing a `last_hidden_state`-shaped tensor [B, num_patches+1, 1024].
    B, C, H, W = images.shape
    gh, gw = H // PATCH, W // PATCH
    patches = images.reshape(B, C, gh, PATCH, gw, PATCH)
    patches = patches.transpose(0, 2, 4, 1, 3, 5).reshape(B, gh * gw, C * PATCH * PATCH)
    tokens = patches @ ep["patch_proj"]                            # [B, N, 1024]
    cls = jnp.broadcast_to(ep["cls_token"], (B, 1, D_IN))
    return jnp.concatenate([cls, tokens], axis=1)                  # [B, N+1, 1024]


@partial(jax.jit, static_argnames=())
def clip_forward(images, enc_params, mlp_params):
    feats = stub_image_encoder(images, enc_params)                 # last_hidden_state
    # CLS slice kept as a cheap fused XLA op; a (TM, 1, 1024) BlockSpec on feats
    # would save only ~B*2KB of HBM traffic on this launch-bound path.
    return clip_mlp_head(feats[:, 0, :], mlp_params)               # CLS token -> MLP


# ------------------------------ reference ---------------------------------- #
def mlp_head_ref(x, p):
    h = x @ p["w1"] + p["b1"]
    h = (h - p["running_mean"]) / jnp.sqrt(p["running_var"] + BN_EPS) * p["gamma"] + p["beta"]
    h = jnp.maximum(h, 0.0)
    return h @ p["w2"] + p["b2"]


# ------------------------------- params ------------------------------------ #
def init_params(key):
    keys = jax.random.split(key, 10)
    lim1 = 1.0 / jnp.sqrt(D_IN)
    lim2 = 1.0 / jnp.sqrt(D_HID)
    mlp = {
        "w1": jax.random.uniform(keys[0], (D_IN, D_HID), jnp.float32, -lim1, lim1),
        "b1": jax.random.uniform(keys[1], (1, D_HID), jnp.float32, -lim1, lim1),
        # non-trivial BN buffers so the host-side fold is actually exercised
        "gamma": 1.0 + 0.05 * jax.random.normal(keys[2], (1, D_HID), jnp.float32),
        "beta": 0.05 * jax.random.normal(keys[3], (1, D_HID), jnp.float32),
        "running_mean": 0.02 * jax.random.normal(keys[4], (1, D_HID), jnp.float32),
        "running_var": jax.random.uniform(keys[5], (1, D_HID), jnp.float32, 0.9, 1.1),
        "w2": jax.random.uniform(keys[6], (D_HID, D_OUT), jnp.float32, -lim2, lim2),
        "b2": jax.random.uniform(keys[7], (1, D_OUT), jnp.float32, -lim2, lim2),
    }
    patch_dim = 3 * PATCH * PATCH
    enc = {
        "patch_proj": jax.random.normal(keys[8], (patch_dim, D_IN), jnp.float32) * 0.02,
        "cls_token": jax.random.normal(keys[9], (D_IN,), jnp.float32) * 0.02,
    }
    return enc, mlp


# --------------------------------- main ------------------------------------ #
if __name__ == "__main__":
    key = jax.random.PRNGKey(0)
    k_params, k_img = jax.random.split(key)
    enc_params, mlp_params = init_params(k_params)

    B = 8
    images = jax.random.normal(k_img, (B, 3, 32, 32), jnp.float32)   # NCHW

    y = clip_forward(images, enc_params, mlp_params)
    jax.block_until_ready(y)
    assert y.shape == (B, D_OUT) and y.dtype == jnp.float32

    # correctness check against a plain-JAX f32 reference of the MLP head
    # (bf16 weights/activations in the kernel -> bf16-level tolerance).
    feats = stub_image_encoder(images, enc_params)
    y_ref = mlp_head_ref(feats[:, 0, :], mlp_params)
    assert jnp.allclose(y, y_ref, atol=2e-3, rtol=1e-2), (
        float(jnp.max(jnp.abs(y - y_ref))))

    print("KERNEL_OK")
</pallas_src>

<mosaic_0001>
module attributes {stable_mosaic.version = 11 : i64} {
  func.func @clip_mlp_kernel(%arg0: i32, %arg1: memref<8x1024xbf16, #tpu.memory_space<vmem>>, %arg2: memref<1024x256xbf16, #tpu.memory_space<vmem>>, %arg3: memref<1x256xf32, #tpu.memory_space<vmem>>, %arg4: memref<256x512xbf16, #tpu.memory_space<vmem>>, %arg5: memref<1x512xf32, #tpu.memory_space<vmem>>, %arg6: memref<8x512xf32, #tpu.memory_space<vmem>>) attributes {dimension_semantics = [#tpu.dimension_semantics<parallel>], iteration_bounds = array<i64: 1>, scalar_prefetch = 0 : i64, scratch_operands = 0 : i64, tpu.core_type = #tpu.core_type<tc>, window_params = [{transform_indices = @transform_0, window_bounds = array<i64: 8, 1024>}, {pipeline_mode = #tpu.pipeline_mode<synchronous>, transform_indices = @transform_1, window_bounds = array<i64: 1024, 256>}, {pipeline_mode = #tpu.pipeline_mode<synchronous>, transform_indices = @transform_2, window_bounds = array<i64: 1, 256>}, {pipeline_mode = #tpu.pipeline_mode<synchronous>, transform_indices = @transform_3, window_bounds = array<i64: 256, 512>}, {pipeline_mode = #tpu.pipeline_mode<synchronous>, transform_indices = @transform_4, window_bounds = array<i64: 1, 512>}, {transform_indices = @transform_5, window_bounds = array<i64: 8, 512>}]} {
    %c0 = arith.constant 0 : index
    %c0_0 = arith.constant 0 : index
    %0 = vector.load %arg1[%c0, %c0_0] : memref<8x1024xbf16, #tpu.memory_space<vmem>>, vector<8x1024xbf16>
    %c0_1 = arith.constant 0 : index
    %c0_2 = arith.constant 0 : index
    %1 = vector.load %arg2[%c0_1, %c0_2] : memref<1024x256xbf16, #tpu.memory_space<vmem>>, vector<1024x256xbf16>
    %cst = arith.constant dense<0.000000e+00> : vector<8x256xf32>
    %2 = tpu.matmul %0, %1, %cst {dimension_numbers = #tpu.dot_dimension_numbers<[1], [0], [0], [1], [0, 0, 1, 1], [], []>} : vector<8x1024xbf16>, vector<1024x256xbf16>, vector<8x256xf32> -> vector<8x256xf32>
    %c0_3 = arith.constant 0 : index
    %c0_4 = arith.constant 0 : index
    %3 = vector.load %arg3[%c0_3, %c0_4] : memref<1x256xf32, #tpu.memory_space<vmem>>, vector<1x256xf32>
    %4 = vector.broadcast %3 : vector<1x256xf32> to vector<8x256xf32>
    %5 = arith.addf %2, %4 : vector<8x256xf32>
    %cst_5 = arith.constant 0.000000e+00 : f32
    %6 = vector.broadcast %cst_5 : f32 to vector<8x256xf32>
    %7 = arith.maximumf %5, %6 : vector<8x256xf32>
    %8 = arith.truncf %7 : vector<8x256xf32> to vector<8x256xbf16>
    %c0_6 = arith.constant 0 : index
    %c0_7 = arith.constant 0 : index
    %9 = vector.load %arg4[%c0_6, %c0_7] : memref<256x512xbf16, #tpu.memory_space<vmem>>, vector<256x512xbf16>
    %cst_8 = arith.constant dense<0.000000e+00> : vector<8x512xf32>
    %10 = tpu.matmul %8, %9, %cst_8 {dimension_numbers = #tpu.dot_dimension_numbers<[1], [0], [0], [1], [0, 0, 1, 1], [], []>} : vector<8x256xbf16>, vector<256x512xbf16>, vector<8x512xf32> -> vector<8x512xf32>
    %c0_9 = arith.constant 0 : index
    %c0_10 = arith.constant 0 : index
    %11 = vector.load %arg5[%c0_9, %c0_10] : memref<1x512xf32, #tpu.memory_space<vmem>>, vector<1x512xf32>
    %12 = vector.broadcast %11 : vector<1x512xf32> to vector<8x512xf32>
    %13 = arith.addf %10, %12 : vector<8x512xf32>
    %c0_11 = arith.constant 0 : index
    %c0_12 = arith.constant 0 : index
    %14 = vector.load %arg6[%c0_11, %c0_12] : memref<8x512xf32, #tpu.memory_space<vmem>>, vector<8x512xf32>
    tpu.vector_store %arg6[%c0_11, %c0_12], %13 {strides = array<i32>} : memref<8x512xf32, #tpu.memory_space<vmem>>, vector<8x512xf32>,
    return
  }
  func.func @transform_0(%arg0: i32) -> (i32, i32) {
    %c0_i32 = arith.constant 0 : i32
    %c0_i32_0 = arith.constant 0 : i32
    return %arg0, %c0_i32 : i32, i32
  }
  func.func @transform_1(%arg0: i32) -> (i32, i32) {
    %c0_i32 = arith.constant 0 : i32
    %c0_i32_0 = arith.constant 0 : i32
    %c0_i32_1 = arith.constant 0 : i32
    return %c0_i32, %c0_i32_0 : i32, i32
  }
  func.func @transform_2(%arg0: i32) -> (i32, i32) {
    %c0_i32 = arith.constant 0 : i32
    %c0_i32_0 = arith.constant 0 : i32
    %c0_i32_1 = arith.constant 0 : i32
    return %c0_i32, %c0_i32_0 : i32, i32
  }
  func.func @transform_3(%arg0: i32) -> (i32, i32) {
    %c0_i32 = arith.constant 0 : i32
    %c0_i32_0 = arith.constant 0 : i32
    %c0_i32_1 = arith.constant 0 : i32
    return %c0_i32, %c0_i32_0 : i32, i32
  }
  func.func @transform_4(%arg0: i32) -> (i32, i32) {
    %c0_i32 = arith.constant 0 : i32
    %c0_i32_0 = arith.constant 0 : i32
    %c0_i32_1 = arith.constant 0 : i32
    return %c0_i32, %c0_i32_0 : i32, i32
  }
  func.func @transform_5(%arg0: i32) -> (i32, i32) {
    %c0_i32 = arith.constant 0 : i32
    %c0_i32_0 = arith.constant 0 : i32
    return %arg0, %c0_i32 : i32, i32
  }
}

</mosaic_0001>

<bundles_post_ra>
// kernel: clip_forward.1
= control target key start
LH: loop header
LB: loop body
LE: loop exit
PB: predicated region body
PF: predicated region fallthrough
CT: control target
= control target key end

     0   :  { %s2666_s0 = inlined_call_operand.vmem [shape: bf16[8,1024], index: 0, kind: input, shape index: {}]   ;;  %s2667_s1 = inlined_call_operand.vmem [shape: bf16[1024,256], index: 1, kind: input, shape index: {}]   ;;  %s2668_s2 = inlined_call_operand.vmem [shape: f32[1,256], index: 2, kind: input, shape index: {}]   ;;  %s2669_s3 = inlined_call_operand.vmem [shape: bf16[256,512], index: 3, kind: input, shape index: {}]   ;;  %s2670_s4 = inlined_call_operand.vmem [shape: f32[1,512], index: 4, kind: input, shape index: {}]   ;;  %s2671_s5 = inlined_call_operand.hbm [shape: f32[8,512], index: 5, kind: output, shape index: {}]  }
   0x1   :  { %v1708_v0 = vld [vmem:[%s2667_s1 + $0x74] ss:$8 sps:$4 sm:$0xff]   ;;  %v1712_v2 = vld [vmem:[%s2667_s1 + $0x70] ss:$8 sps:$4 sm:$0xff]   ;;  %v1714_v4 = vld [vmem:[%s2667_s1 + $0x64] ss:$8 sps:$4 sm:$0xff]  }
   0x2   :  { %v1710_v1 = vld [vmem:[%s2667_s1 + $0x174] ss:$8 sps:$4 sm:$0xff]   ;;  %833 = vmatprep.subr.bf16.mxu0 %v1708_v0  ;;  %v1713_v3 = vld [vmem:[%s2667_s1 + $0x170] ss:$8 sps:$4 sm:$0xff]   ;;  %v1716_v5 = vld [vmem:[%s2667_s1 + $0x164] ss:$8 sps:$4 sm:$0xff]  }
   0x3   :  { %874 = vmatprep.subr.bf16.mxu1 %v1710_v1  ;;  %834 = vmatpush1.bf16.msra.mxu0 %v1712_v2  ;;  %v1718_v6 = vld [vmem:[%s2667_s1 + $0x60] ss:$8 sps:$4 sm:$0xff]   ;;  %v1720_v8 = vld [vmem:[%s2667_s1 + $0x54] ss:$8 sps:$4 sm:$0xff]   ;;  %v1724_v10 = vld [vmem:[%s2667_s1 + $0x50] ss:$8 sps:$4 sm:$0xff]  }
   0x4   :  { %875 = vmatpush1.bf16.msra.mxu1 %v1713_v3  ;;  %835 = vmatprep.subr.bf16.mxu0 %v1714_v4  ;;  %v1719_v7 = vld [vmem:[%s2667_s1 + $0x160] ss:$8 sps:$4 sm:$0xff]   ;;  %v1722_v9 = vld [vmem:[%s2667_s1 + $0x154] ss:$8 sps:$4 sm:$0xff]   ;;  %v1725_v11 = vld [vmem:[%s2667_s1 + $0x150] ss:$8 sps:$4 sm:$0xff]  }
   0x5   :  { %876 = vmatprep.subr.bf16.mxu1 %v1716_v5  ;;  %v1726_v12 = vld [vmem:[%s2667_s1 + $0x44] ss:$8 sps:$4 sm:$0xff]   ;;  %v1730_v14 = vld [vmem:[%s2667_s1 + $0x40] ss:$8 sps:$4 sm:$0xff]   ;;  %v1732_v16 = vld [vmem:[%s2667_s1 + $0x34] ss:$8 sps:$4 sm:$0xff]  }
   0x6   :  { %v1728_v13 = vld [vmem:[%s2667_s1 + $0x144] ss:$8 sps:$4 sm:$0xff]   ;;  %v1731_v15 = vld [vmem:[%s2667_s1 + $0x140] ss:$8 sps:$4 sm:$0xff]   ;;  %v1734_v17 = vld [vmem:[%s2667_s1 + $0x134] ss:$8 sps:$4 sm:$0xff]  }
   0x7   :  { %836 = vmatpush1.bf16.msra.mxu0 %v1718_v6  ;;  %v1736_v18 = vld [vmem:[%s2667_s1 + $0x30] ss:$8 sps:$4 sm:$0xff]   ;;  %v1738_v20 = vld [vmem:[%s2667_s1 + $0x24] ss:$8 sps:$4 sm:$0xff]   ;;  %v1742_v22 = vld [vmem:[%s2667_s1 + $0x20] ss:$8 sps:$4 sm:$0xff]  }
   0x8   :  { %877 = vmatpush1.bf16.msra.mxu1 %v1719_v7  ;;  %837 = vmatprep.subr.bf16.mxu0 %v1720_v8  ;;  %v1737_v19 = vld [vmem:[%s2667_s1 + $0x130] ss:$8 sps:$4 sm:$0xff]   ;;  %v1740_v21 = vld [vmem:[%s2667_s1 + $0x124] ss:$8 sps:$4 sm:$0xff]   ;;  %v1743_v23 = vld [vmem:[%s2667_s1 + $0x120] ss:$8 sps:$4 sm:$0xff]  }
   0x9   :  { %878 = vmatprep.subr.bf16.mxu1 %v1722_v9  ;;  %v1744_v24 = vld [vmem:[%s2667_s1 + $0x14] ss:$8 sps:$4 sm:$0xff]   ;;  %v1748_v26 = vld [vmem:[%s2667_s1 + $0x10] ss:$8 sps:$4 sm:$0xff]   ;;  %v1750_v28 = vld [vmem:[%s2667_s1 + $0x4] ss:$8 sps:$4 sm:$0xff]  }
   0xa   :  { %v1746_v25 = vld [vmem:[%s2667_s1 + $0x114] ss:$8 sps:$4 sm:$0xff]   ;;  %v1749_v27 = vld [vmem:[%s2667_s1 + $0x110] ss:$8 sps:$4 sm:$0xff]   ;;  %v1752_v29 = vld [vmem:[%s2667_s1 + $0x104] ss:$8 sps:$4 sm:$0xff]  }
   0xb   :  { %838 = vmatpush1.bf16.msra.mxu0 %v1724_v10  ;;  %v1754_v30 = vld [vmem:[%s2667_s1] ss:$8 sps:$4 sm:$0xff]   ;;  %v1756_v32 = vld [vmem:[%s2667_s1 + $0xf4] ss:$8 sps:$4 sm:$0xff]   ;;  %v1760_v34 = vld [vmem:[%s2667_s1 + $0xf0] ss:$8 sps:$4 sm:$0xff]  }
   0xc   :  { %879 = vmatpush1.bf16.msra.mxu1 %v1725_v11  ;;  %839 = vmatprep.subr.bf16.mxu0 %v1726_v12  ;;  %v1755_v31 = vld [vmem:[%s2667_s1 + $0x100] ss:$8 sps:$4 sm:$0xff]   ;;  %v1758_v33 = vld [vmem:[%s2667_s1 + $0x1f4] ss:$8 sps:$4 sm:$0xff]   ;;  %v1761_v35 = vld [vmem:[%s2667_s1 + $0x1f0] ss:$8 sps:$4 sm:$0xff]  }
   0xd   :  { %880 = vmatprep.subr.bf16.mxu1 %v1728_v13  ;;  %v1762_v36 = vld [vmem:[%s2667_s1 + $0xe4] ss:$8 sps:$4 sm:$0xff]   ;;  %v1766_v38 = vld [vmem:[%s2667_s1 + $0xe0] ss:$8 sps:$4 sm:$0xff]   ;;  %v1768_v40 = vld [vmem:[%s2667_s1 + $0xd4] ss:$8 sps:$4 sm:$0xff]  }
   0xe   :  { %v1764_v37 = vld [vmem:[%s2667_s1 + $0x1e4] ss:$8 sps:$4 sm:$0xff]   ;;  %v1767_v39 = vld [vmem:[%s2667_s1 + $0x1e0] ss:$8 sps:$4 sm:$0xff]   ;;  %v1770_v41 = vld [vmem:[%s2667_s1 + $0x1d4] ss:$8 sps:$4 sm:$0xff]  }
   0xf   :  { %840 = vmatpush1.bf16.msra.mxu0 %v1730_v14  ;;  %v1772_v42 = vld [vmem:[%s2667_s1 + $0xd0] ss:$8 sps:$4 sm:$0xff]   ;;  %v1774_v44 = vld [vmem:[%s2667_s1 + $0xc4] ss:$8 sps:$4 sm:$0xff]   ;;  %v1778_v49 = vld [vmem:[%s2667_s1 + $0xc0] ss:$8 sps:$4 sm:$0xff]  }
  0x10   :  { %881 = vmatpush1.bf16.msra.mxu1 %v1731_v15  ;;  %841 = vmatprep.subr.bf16.mxu0 %v1732_v16  ;;  %v1773_v43 = vld [vmem:[%s2667_s1 + $0x1d0] ss:$8 sps:$4 sm:$0xff]   ;;  %v1776_v45 = vld [vmem:[%s2667_s1 + $0x1c4] ss:$8 sps:$4 sm:$0xff]   ;;  %v1779_v50 = vld [vmem:[%s2667_s1 + $0x1c0] ss:$8 sps:$4 sm:$0xff]  }
  0x11   :  { %882 = vmatprep.subr.bf16.mxu1 %v1734_v17  ;;  %v21_v46 = vld [vmem:[%s2666_s0] sm:$0xff]  ;;  %v22_v48 = vld [vmem:[%s2666_s0 + $0x8] sm:$0xff]  ;;  %v1780_v52 = vld [vmem:[%s2667_s1 + $0xb4] ss:$8 sps:$4 sm:$0xff]  }
  0x12   :  { %v1508_v47 = vcombine.high %v21_v46, %v21_v46  ;;  %v1510_v51 = vcombine.high %v22_v48, %v22_v48  ;;  %v1782_v53 = vld [vmem:[%s2667_s1 + $0x1b4] ss:$8 sps:$4 sm:$0xff]   ;;  %v1784_v54 = vld [vmem:[%s2667_s1 + $0xb0] ss:$8 sps:$4 sm:$0xff]   ;;  %v1786_v56 = vld [vmem:[%s2667_s1 + $0xa4] ss:$8 sps:$4 sm:$0xff]   ;;  %v1507_v6 = vcombine.low %v21_v46, %v21_v46  ;;  %v1509_v7 = vcombine.low %v22_v48, %v22_v48 }
  0x13   :  { %842 = vmatpush1.bf16.msra.mxu0 %v1736_v18  ;;  %v1785_v55 = vld [vmem:[%s2667_s1 + $0x1b0] ss:$8 sps:$4 sm:$0xff]   ;;  %v1788_v57 = vld [vmem:[%s2667_s1 + $0x1a4] ss:$8 sps:$4 sm:$0xff]   ;;  %v1790_v58 = vld [vmem:[%s2667_s1 + $0xa0] ss:$8 sps:$4 sm:$0xff]  }
  0x14   :  { %883 = vmatpush1.bf16.msra.mxu1 %v1737_v19  ;;  %843 = vmatprep.subr.bf16.mxu0 %v1738_v20  ;;  %v1791_v59 = vld [vmem:[%s2667_s1 + $0x1a0] ss:$8 sps:$4 sm:$0xff]   ;;  %v1792_v60 = vld [vmem:[%s2667_s1 + $0x94] ss:$8 sps:$4 sm:$0xff]   ;;  %v1796_v62 = vld [vmem:[%s2667_s1 + $0x90] ss:$8 sps:$4 sm:$0xff]  }
  0x15   :  { %884 = vmatprep.subr.bf16.mxu1 %v1740_v21  ;;  %865 = vmatprep.mubr.bf16.mxu0 %v1508_v47  ;;  %v1794_v61 = vld [vmem:[%s2667_s1 + $0x194] ss:$8 sps:$4 sm:$0xff]   ;;  %v1797_v63 = vld [vmem:[%s2667_s1 + $0x190] ss:$8 sps:$4 sm:$0xff]   ;;  %v1798_v0 = vld [vmem:[%s2667_s1 + $0x84] ss:$8 sps:$4 sm:$0xff]  }
  0x16   :  { %906 = vmatprep.mubr.bf16.mxu1 %v1510_v51  ;;  %v1800_v1 = vld [vmem:[%s2667_s1 + $0x184] ss:$8 sps:$4 sm:$0xff]   ;;  %v1802_v2 = vld [vmem:[%s2667_s1 + $0x80] ss:$8 sps:$4 sm:$0xff]   ;;  %v1810_v4 = vld [vmem:[%s2667_s1 + $0x274] ss:$8 sps:$4 sm:$0xff]  }
  0x17   :  { %844 = vmatpush1.bf16.msra.mxu0 %v1742_v22  ;;  %v1803_v3 = vld [vmem:[%s2667_s1 + $0x180] ss:$8 sps:$4 sm:$0xff]   ;;  %v1813_v5 = vld [vmem:[%s2667_s1 + $0x374] ss:$8 sps:$4 sm:$0xff]   ;;  %v1808_v8 = vld [vmem:[%s2667_s1 + $0x270] ss:$8 sps:$4 sm:$0xff]  }
  0x18   :  { %885 = vmatpush1.bf16.msra.mxu1 %v1743_v23  ;;  %845 = vmatprep.subr.bf16.mxu0 %v1744_v24  ;;  %v1811_v9 = vld [vmem:[%s2667_s1 + $0x370] ss:$8 sps:$4 sm:$0xff]   ;;  %v1816_v10 = vld [vmem:[%s2667_s1 + $0x264] ss:$8 sps:$4 sm:$0xff]   ;;  %v1814_v12 = vld [vmem:[%s2667_s1 + $0x260] ss:$8 sps:$4 sm:$0xff]  }
  0x19   :  { %886 = vmatprep.subr.bf16.mxu1 %v1746_v25  ;;  %v1819_v11 = vld [vmem:[%s2667_s1 + $0x364] ss:$8 sps:$4 sm:$0xff]   ;;  %v1817_v13 = vld [vmem:[%s2667_s1 + $0x360] ss:$8 sps:$4 sm:$0xff]   ;;  %v1822_v14 = vld [vmem:[%s2667_s1 + $0x254] ss:$8 sps:$4 sm:$0xff]  }
  0x1a   :  { %v1825_v15 = vld [vmem:[%s2667_s1 + $0x354] ss:$8 sps:$4 sm:$0xff]   ;;  %v1820_v16 = vld [vmem:[%s2667_s1 + $0x250] ss:$8 sps:$4 sm:$0xff]   ;;  %v1828_v18 = vld [vmem:[%s2667_s1 + $0x244] ss:$8 sps:$4 sm:$0xff]  }
  0x1b   :  { %846 = vmatpush1.bf16.msra.mxu0 %v1748_v26  ;;  %v1823_v17 = vld [vmem:[%s2667_s1 + $0x350] ss:$8 sps:$4 sm:$0xff]   ;;  %v1831_v19 = vld [vmem:[%s2667_s1 + $0x344] ss:$8 sps:$4 sm:$0xff]   ;;  %v1826_v20 = vld [vmem:[%s2667_s1 + $0x240] ss:$8 sps:$4 sm:$0xff]  }
  0x1c   :  { %887 = vmatpush1.bf16.msra.mxu1 %v1749_v27  ;;  %847 = vmatprep.subr.bf16.mxu0 %v1750_v28  ;;  %v1829_v21 = vld [vmem:[%s2667_s1 + $0x340] ss:$8 sps:$4 sm:$0xff]   ;;  %v1834_v22 = vld [vmem:[%s2667_s1 + $0x234] ss:$8 sps:$4 sm:$0xff]   ;;  %v1832_v24 = vld [vmem:[%s2667_s1 + $0x230] ss:$8 sps:$4 sm:$0xff]  }
  0x1d   :  { %888 = vmatprep.subr.bf16.mxu1 %v1752_v29  ;;  %v1837_v23 = vld [vmem:[%s2667_s1 + $0x334] ss:$8 sps:$4 sm:$0xff]   ;;  %v1835_v25 = vld [vmem:[%s2667_s1 + $0x330] ss:$8 sps:$4 sm:$0xff]   ;;  %v1840_v26 = vld [vmem:[%s2667_s1 + $0x224] ss:$8 sps:$4 sm:$0xff]  }
  0x1e   :  { %v1843_v27 = vld [vmem:[%s2667_s1 + $0x324] ss:$8 sps:$4 sm:$0xff]   ;;  %v1838_v28 = vld [vmem:[%s2667_s1 + $0x220] ss:$8 sps:$4 sm:$0xff]   ;;  %v1873_v51 = vld [vmem:[%s2667_s1 + $0x3d4] ss:$8 sps:$4 sm:$0xff]  }
  0x1f   :  { %848 = vmatpush1.bf16.msra.mxu0 %v1754_v30  ;;  %v1841_v29 = vld [vmem:[%s2667_s1 + $0x320] ss:$8 sps:$4 sm:$0xff]   ;;  %v1846_v30 = vld [vmem:[%s2667_s1 + $0x214] ss:$8 sps:$4 sm:$0xff]   ;;  %v1864_v46 = vld [vmem:[%s2667_s1 + $0x2e4] ss:$8 sps:$4 sm:$0xff]  }
  0x20   :  { %889 = vmatpush1.bf16.msra.mxu1 %v1755_v31  ;;  %849 = vmatprep.subr.bf16.mxu0 %v1756_v32  ;;  %v1849_v31 = vld [vmem:[%s2667_s1 + $0x314] ss:$8 sps:$4 sm:$0xff]   ;;  %v1844_v32 = vld [vmem:[%s2667_s1 + $0x210] ss:$8 sps:$4 sm:$0xff]   ;;  %v1867_v47 = vld [vmem:[%s2667_s1 + $0x3e4] ss:$8 sps:$4 sm:$0xff]  }
  0x21   :  { %890 = vmatprep.subr.bf16.mxu1 %v1758_v33  ;;  %v1847_v33 = vld [vmem:[%s2667_s1 + $0x310] ss:$8 sps:$4 sm:$0xff]   ;;  %v1862_v48 = vld [vmem:[%s2667_s1 + $0x2e0] ss:$8 sps:$4 sm:$0xff]  }
  0x23   :  { %850 = vmatpush2.bf16.msra.mxu0 %v1760_v34  ;;  %v2342_v34 = vld [vmem:[%s2666_s0 + $0x10] sm:$0xff] }
  0x24   :  { %891 = vmatpush2.bf16.msra.mxu1 %v1761_v35  ;;  %851 = vmatprep.subr.bf16.mxu0 %v1762_v36  ;;  %v2347_v35 = vld [vmem:[%s2666_s0 + $0x18] sm:$0xff]  ;;  %v1852_v36 = vld [vmem:[%s2667_s1 + $0x204] ss:$8 sps:$4 sm:$0xff]  }
  0x25   :  { %892 = vmatprep.subr.bf16.mxu1 %v1764_v37  ;;  %v1855_v37 = vld [vmem:[%s2667_s1 + $0x304] ss:$8 sps:$4 sm:$0xff]  }
  0x27   :  { %852 = vmatpush2.bf16.msra.mxu0 %v1766_v38  ;;  %v1512_v38 = vcombine.high %v2342_v34, %v2342_v34 }
  0x28   :  { %893 = vmatpush2.bf16.msra.mxu1 %v1767_v39  ;;  %853 = vmatprep.subr.bf16.mxu0 %v1768_v40  ;;  %v1514_v39 = vcombine.high %v2347_v35, %v2347_v35  ;;  %v1850_v40 = vld [vmem:[%s2667_s1 + $0x200] ss:$8 sps:$4 sm:$0xff]  }
  0x29   :  { %894 = vmatprep.subr.bf16.mxu1 %v1770_v41  ;;  %v1853_v41 = vld [vmem:[%s2667_s1 + $0x300] ss:$8 sps:$4 sm:$0xff]  }
  0x2b   :  { %854 = vmatpush2.bf16.msra.mxu0 %v1772_v42  ;;  %v1858_v42 = vld [vmem:[%s2667_s1 + $0x2f4] ss:$8 sps:$4 sm:$0xff]  }
  0x2c   :  { %895 = vmatpush2.bf16.msra.mxu1 %v1773_v43  ;;  %855 = vmatprep.subr.bf16.mxu0 %v1774_v44  ;;  %v1861_v43 = vld [vmem:[%s2667_s1 + $0x3f4] ss:$8 sps:$4 sm:$0xff]   ;;  %v1856_v44 = vld [vmem:[%s2667_s1 + $0x2f0] ss:$8 sps:$4 sm:$0xff]  }
  0x2d   :  { %896 = vmatprep.subr.bf16.mxu1 %v1776_v45  ;;  %v1859_v45 = vld [vmem:[%s2667_s1 + $0x3f0] ss:$8 sps:$4 sm:$0xff]  }
  0x2f   :  { %856 = vmatpush2.bf16.msra.mxu0 %v1778_v49  ;;  %v1865_v49 = vld [vmem:[%s2667_s1 + $0x3e0] ss:$8 sps:$4 sm:$0xff]  }
  0x30   :  { %897 = vmatpush2.bf16.msra.mxu1 %v1779_v50  ;;  %857 = vmatprep.subr.bf16.mxu0 %v1780_v52  ;;  %v1870_v50 = vld [vmem:[%s2667_s1 + $0x2d4] ss:$8 sps:$4 sm:$0xff]   ;;  %v1868_v52 = vld [vmem:[%s2667_s1 + $0x2d0] ss:$8 sps:$4 sm:$0xff]  }
  0x31   :  { %898 = vmatprep.subr.bf16.mxu1 %v1782_v53  ;;  %v1871_v53 = vld [vmem:[%s2667_s1 + $0x3d0] ss:$8 sps:$4 sm:$0xff]  }
  0x33   :  { %858 = vmatpush2.bf16.msra.mxu0 %v1784_v54  ;;  %v1876_v54 = vld [vmem:[%s2667_s1 + $0x2c4] ss:$8 sps:$4 sm:$0xff]  }
  0x34   :  { %899 = vmatpush2.bf16.msra.mxu1 %v1785_v55  ;;  %859 = vmatprep.subr.bf16.mxu0 %v1786_v56  ;;  %v1879_v55 = vld [vmem:[%s2667_s1 + $0x3c4] ss:$8 sps:$4 sm:$0xff]   ;;  %v1874_v56 = vld [vmem:[%s2667_s1 + $0x2c0] ss:$8 sps:$4 sm:$0xff]  }
  0x35   :  { %900 = vmatprep.subr.bf16.mxu1 %v1788_v57  ;;  %v1877_v57 = vld [vmem:[%s2667_s1 + $0x3c0] ss:$8 sps:$4 sm:$0xff]  }
  0x37   :  { %860 = vmatpush2.bf16.msra.mxu0 %v1790_v58 }
  0x38   :  { %901 = vmatpush2.bf16.msra.mxu1 %v1791_v59  ;;  %861 = vmatprep.subr.bf16.mxu0 %v1792_v60 }
  0x39   :  { %902 = vmatprep.subr.bf16.mxu1 %v1794_v61 }
  0x3b   :  { %862 = vmatpush2.bf16.msra.mxu0 %v1796_v62 }
  0x3c   :  { %903 = vmatpush2.bf16.msra.mxu1 %v1797_v63  ;;  %863 = vmatprep.subr.bf16.mxu0 %v1798_v0 }
  0x3d   :  { %904 = vmatprep.subr.bf16.mxu1 %v1800_v1 }
  0x3f   :  { %864 = vmatpush2.bf16.msra.mxu0 %v1802_v2 }
  0x40   :  { %905 = vmatpush2.bf16.msra.mxu1 %v1803_v3  ;;  %915 = vmatprep.subr.bf16.mxu0 %v1810_v4 }
  0x41   :  { %956 = vmatprep.subr.bf16.mxu1 %v1813_v5 }
  0x42   :  { %866 = vmatmul.mubr.bf16.vlgmr.msra.gmra.mxu0 %v1507_v6 }
  0x43   :  { %907 = vmatmul.mubr.bf16.vlgmr.msra.gmra.mxu1 %v1509_v7  ;;  %916 = vmatpush1.bf16.msra.mxu0 %v1808_v8 }
  0x44   :  { %957 = vmatpush1.bf16.msra.mxu1 %v1811_v9  ;;  %917 = vmatprep.subr.bf16.mxu0 %v1816_v10 }
  0x45   :  { %958 = vmatprep.subr.bf16.mxu1 %v1819_v11  ;;  %947 = vmatprep.mubr.bf16.mxu0 %v1512_v38 }
  0x46   :  { %988 = vmatprep.mubr.bf16.mxu1 %v1514_v39 }
  0x47   :  { %918 = vmatpush1.bf16.msra.mxu0 %v1814_v12 }
  0x48   :  { %959 = vmatpush1.bf16.msra.mxu1 %v1817_v13  ;;  %919 = vmatprep.subr.bf16.mxu0 %v1822_v14 }
  0x49   :  { %960 = vmatprep.subr.bf16.mxu1 %v1825_v15 }
  0x4b   :  { %920 = vmatpush1.bf16.msra.mxu0 %v1820_v16 }
  0x4c   :  { %961 = vmatpush1.bf16.msra.mxu1 %v1823_v17  ;;  %921 = vmatprep.subr.bf16.mxu0 %v1828_v18 }
  0x4d   :  { %962 = vmatprep.subr.bf16.mxu1 %v1831_v19 }
  0x4f   :  { %922 = vmatpush1.bf16.msra.mxu0 %v1826_v20 }
  0x50   :  { %963 = vmatpush1.bf16.msra.mxu1 %v1829_v21  ;;  %923 = vmatprep.subr.bf16.mxu0 %v1834_v22 }
  0x51   :  { %964 = vmatprep.subr.bf16.mxu1 %v1837_v23 }
  0x53   :  { %924 = vmatpush1.bf16.msra.mxu0 %v1832_v24 }
  0x54   :  { %965 = vmatpush1.bf16.msra.mxu1 %v1835_v25  ;;  %925 = vmatprep.subr.bf16.mxu0 %v1840_v26 }
  0x55   :  { %966 = vmatprep.subr.bf16.mxu1 %v1843_v27 }
  0x57   :  { %926 = vmatpush1.bf16.msra.mxu0 %v1838_v28 }
  0x58   :  { %967 = vmatpush1.bf16.msra.mxu1 %v1841_v29  ;;  %927 = vmatprep.subr.bf16.mxu0 %v1846_v30 }
  0x59   :  { %968 = vmatprep.subr.bf16.mxu1 %v1849_v31 }
  0x5b   :  { %928 = vmatpush1.bf16.msra.mxu0 %v1844_v32 }
  0x5c   :  { %969 = vmatpush1.bf16.msra.mxu1 %v1847_v33  ;;  %929 = vmatprep.subr.bf16.mxu0 %v1852_v36 }
  0x5d   :  { %970 = vmatprep.subr.bf16.mxu1 %v1855_v37 }
  0x5f   :  { %930 = vmatpush1.bf16.msra.mxu0 %v1850_v40 }
  0x60   :  { %971 = vmatpush1.bf16.msra.mxu1 %v1853_v41  ;;  %931 = vmatprep.subr.bf16.mxu0 %v1858_v42 }
  0x61   :  { %972 = vmatprep.subr.bf16.mxu1 %v1861_v43 }
  0x63   :  { %932 = vmatpush2.bf16.msra.mxu0 %v1856_v44 }
  0x64   :  { %973 = vmatpush2.bf16.msra.mxu1 %v1859_v45  ;;  %933 = vmatprep.subr.bf16.mxu0 %v1864_v46 }
  0x65   :  { %974 = vmatprep.subr.bf16.mxu1 %v1867_v47 }
  0x67   :  { %934 = vmatpush2.bf16.msra.mxu0 %v1862_v48 }
  0x68   :  { %975 = vmatpush2.bf16.msra.mxu1 %v1865_v49  ;;  %935 = vmatprep.subr.bf16.mxu0 %v1870_v50 }
  0x69   :  { %976 = vmatprep.subr.bf16.mxu1 %v1873_v51 }
  0x6b   :  { %936 = vmatpush2.bf16.msra.mxu0 %v1868_v52 }
  0x6c   :  { %977 = vmatpush2.bf16.msra.mxu1 %v1871_v53 }
  0x6d   :  { %10 = vsyncpa [#allocation3], 0  ;;  %937 = vmatprep.subr.bf16.mxu0 %v1876_v54  ;;  %978 = vmatprep.subr.bf16.mxu1 %v1879_v55  ;;  %v1882_v58 = vld [vmem:[%s2667_s1 + $0x2b4] ss:$8 sps:$4 sm:$0xff]   ;;  %v1880_v60 = vld [vmem:[%s2667_s1 + $0x2b0] ss:$8 sps:$4 sm:$0xff]   ;;  %v1511_v10 = vcombine.low %v2342_v34, %v2342_v34  ;;  %v1513_v11 = vcombine.low %v2347_v35, %v2347_v35 }
  0x6e   :  { %v1885_v59 = vld [vmem:[%s2667_s1 + $0x3b4] ss:$8 sps:$4 sm:$0xff]   ;;  %v1883_v61 = vld [vmem:[%s2667_s1 + $0x3b0] ss:$8 sps:$4 sm:$0xff]   ;;  %v1888_v62 = vld [vmem:[%s2667_s1 + $0x2a4] ss:$8 sps:$4 sm:$0xff]  }
  0x6f   :  { %938 = vmatpush2.bf16.msra.mxu0 %v1874_v56  ;;  %v1891_v63 = vld [vmem:[%s2667_s1 + $0x3a4] ss:$8 sps:$4 sm:$0xff]   ;;  %v1886_v0 = vld [vmem:[%s2667_s1 + $0x2a0] ss:$8 sps:$4 sm:$0xff]   ;;  %v1894_v2 = vld [vmem:[%s2667_s1 + $0x294] ss:$8 sps:$4 sm:$0xff]  }
  0x70   :  { %979 = vmatpush2.bf16.msra.mxu1 %v1877_v57  ;;  %939 = vmatprep.subr.bf16.mxu0 %v1882_v58  ;;  %v1889_v1 = vld [vmem:[%s2667_s1 + $0x3a0] ss:$8 sps:$4 sm:$0xff]   ;;  %v1897_v3 = vld [vmem:[%s2667_s1 + $0x394] ss:$8 sps:$4 sm:$0xff]   ;;  %v1892_v4 = vld [vmem:[%s2667_s1 + $0x290] ss:$8 sps:$4 sm:$0xff]  }
  0x71   :  { %980 = vmatprep.subr.bf16.mxu1 %v1885_v59  ;;  %v1895_v5 = vld [vmem:[%s2667_s1 + $0x390] ss:$8 sps:$4 sm:$0xff]   ;;  %v1900_v6 = vld [vmem:[%s2667_s1 + $0x284] ss:$8 sps:$4 sm:$0xff]   ;;  %v1898_v8 = vld [vmem:[%s2667_s1 + $0x280] ss:$8 sps:$4 sm:$0xff]  }
  0x72   :  { %v1903_v7 = vld [vmem:[%s2667_s1 + $0x384] ss:$8 sps:$4 sm:$0xff]   ;;  %v1901_v9 = vld [vmem:[%s2667_s1 + $0x380] ss:$8 sps:$4 sm:$0xff]   ;;  %s2026_s24 = smov [#allocation2]  }
  0x73   :  { %940 = vmatpush2.bf16.msra.mxu0 %v1880_v60  ;;  %v1908_v12 = vld [vmem:[%s2669_s3 + $0xe0] ss:$16 sps:$4 sm:$0xff]   ;;  %v1910_v13 = vld [vmem:[%s2669_s3 + $0xe4] ss:$16 sps:$4 sm:$0xff]   ;;  %v1911_v14 = vld [vmem:[%s2669_s3 + $0xe8] ss:$16 sps:$4 sm:$0xff]  }
  0x74   :  { %981 = vmatpush2.bf16.msra.mxu1 %v1883_v61  ;;  %941 = vmatprep.subr.bf16.mxu0 %v1888_v62  ;;  %v1913_v15 = vld [vmem:[%s2669_s3 + $0xec] ss:$16 sps:$4 sm:$0xff]   ;;  %v1916_v16 = vld [vmem:[%s2669_s3 + $0xc4] ss:$16 sps:$4 sm:$0xff]   ;;  %v1914_v18 = vld [vmem:[%s2669_s3 + $0xc0] ss:$16 sps:$4 sm:$0xff]  }
  0x75   :  { %982 = vmatprep.subr.bf16.mxu1 %v1891_v63  ;;  %v1919_v17 = vld [vmem:[%s2669_s3 + $0xcc] ss:$16 sps:$4 sm:$0xff]   ;;  %v1917_v19 = vld [vmem:[%s2669_s3 + $0xc8] ss:$16 sps:$4 sm:$0xff]   ;;  %v1922_v20 = vld [vmem:[%s2669_s3 + $0xa4] ss:$16 sps:$4 sm:$0xff]  }
  0x76   :  { %v1925_v21 = vld [vmem:[%s2669_s3 + $0xac] ss:$16 sps:$4 sm:$0xff]   ;;  %v1920_v22 = vld [vmem:[%s2669_s3 + $0xa0] ss:$16 sps:$4 sm:$0xff]   ;;  %v1923_v23 = vld [vmem:[%s2669_s3 + $0xa8] ss:$16 sps:$4 sm:$0xff]  }
  0x77   :  { %942 = vmatpush2.bf16.msra.mxu0 %v1886_v0  ;;  %v1928_v24 = vld [vmem:[%s2669_s3 + $0x84] ss:$16 sps:$4 sm:$0xff]   ;;  %v1931_v25 = vld [vmem:[%s2669_s3 + $0x8c] ss:$16 sps:$4 sm:$0xff]   ;;  %v1926_v26 = vld [vmem:[%s2669_s3 + $0x80] ss:$16 sps:$4 sm:$0xff]  }
  0x78   :  { %983 = vmatpush2.bf16.msra.mxu1 %v1889_v1  ;;  %943 = vmatprep.subr.bf16.mxu0 %v1894_v2  ;;  %v1929_v27 = vld [vmem:[%s2669_s3 + $0x88] ss:$16 sps:$4 sm:$0xff]   ;;  %v1934_v28 = vld [vmem:[%s2669_s3 + $0x64] ss:$16 sps:$4 sm:$0xff]   ;;  %v1937_v29 = vld [vmem:[%s2669_s3 + $0x6c] ss:$16 sps:$4 sm:$0xff]  }
  0x79   :  { %984 = vmatprep.subr.bf16.mxu1 %v1897_v3  ;;  %v1932_v30 = vld [vmem:[%s2669_s3 + $0x60] ss:$16 sps:$4 sm:$0xff]   ;;  %v1935_v31 = vld [vmem:[%s2669_s3 + $0x68] ss:$16 sps:$4 sm:$0xff]   ;;  %v1940_v32 = vld [vmem:[%s2669_s3 + $0x44] ss:$16 sps:$4 sm:$0xff]  }
  0x7a   :  { %v1943_v33 = vld [vmem:[%s2669_s3 + $0x4c] ss:$16 sps:$4 sm:$0xff]   ;;  %v1938_v34 = vld [vmem:[%s2669_s3 + $0x40] ss:$16 sps:$4 sm:$0xff]   ;;  %v1941_v35 = vld [vmem:[%s2669_s3 + $0x48] ss:$16 sps:$4 sm:$0xff]  }
  0x7b   :  { %944 = vmatpush2.bf16.msra.mxu0 %v1892_v4  ;;  %v1946_v36 = vld [vmem:[%s2669_s3 + $0x24] ss:$16 sps:$4 sm:$0xff]   ;;  %v1949_v37 = vld [vmem:[%s2669_s3 + $0x2c] ss:$16 sps:$4 sm:$0xff]   ;;  %v1944_v38 = vld [vmem:[%s2669_s3 + $0x20] ss:$16 sps:$4 sm:$0xff]  }
  0x7c   :  { %985 = vmatpush2.bf16.msra.mxu1 %v1895_v5  ;;  %945 = vmatprep.subr.bf16.mxu0 %v1900_v6  ;;  %v1947_v39 = vld [vmem:[%s2669_s3 + $0x28] ss:$16 sps:$4 sm:$0xff]   ;;  %v1952_v40 = vld [vmem:[%s2669_s3 + $0x4] ss:$16 sps:$4 sm:$0xff]   ;;  %v1955_v41 = vld [vmem:[%s2669_s3 + $0xc] ss:$16 sps:$4 sm:$0xff]  }
  0x7d   :  { %986 = vmatprep.subr.bf16.mxu1 %v1903_v7  ;;  %v1950_v42 = vld [vmem:[%s2669_s3] ss:$16 sps:$4 sm:$0xff]   ;;  %v1953_v43 = vld [vmem:[%s2669_s3 + $0x8] ss:$16 sps:$4 sm:$0xff]   ;;  %v1958_v44 = vld [vmem:[%s2669_s3 + $0x1e4] ss:$16 sps:$4 sm:$0xff]  }
  0x7e   :  { %v1961_v45 = vld [vmem:[%s2669_s3 + $0x1ec] ss:$16 sps:$4 sm:$0xff]   ;;  %v1956_v46 = vld [vmem:[%s2669_s3 + $0x1e0] ss:$16 sps:$4 sm:$0xff]   ;;  %v1959_v47 = vld [vmem:[%s2669_s3 + $0x1e8] ss:$16 sps:$4 sm:$0xff]  }
  0x7f   :  { %946 = vmatpush2.bf16.msra.mxu0 %v1898_v8  ;;  %v1964_v48 = vld [vmem:[%s2669_s3 + $0x1c4] ss:$16 sps:$4 sm:$0xff]   ;;  %v1967_v49 = vld [vmem:[%s2669_s3 + $0x1cc] ss:$16 sps:$4 sm:$0xff]   ;;  %v1962_v50 = vld [vmem:[%s2669_s3 + $0x1c0] ss:$16 sps:$4 sm:$0xff]  }
  0x80   :  { %987 = vmatpush2.bf16.msra.mxu1 %v1901_v9  ;;  %1407 = vmatprep.subr.bf16.mxu0 %v1910_v13  ;;  %v1965_v51 = vld [vmem:[%s2669_s3 + $0x1c8] ss:$16 sps:$4 sm:$0xff]   ;;  %v1970_v52 = vld [vmem:[%s2669_s3 + $0x1a4] ss:$16 sps:$4 sm:$0xff]   ;;  %v1973_v53 = vld [vmem:[%s2669_s3 + $0x1ac] ss:$16 sps:$4 sm:$0xff]  }
  0x81   :  { %1448 = vmatprep.subr.bf16.mxu1 %v1913_v15  ;;  %v1968_v54 = vld [vmem:[%s2669_s3 + $0x1a0] ss:$16 sps:$4 sm:$0xff]   ;;  %v1971_v55 = vld [vmem:[%s2669_s3 + $0x1a8] ss:$16 sps:$4 sm:$0xff]   ;;  %v1976_v56 = vld [vmem:[%s2669_s3 + $0x184] ss:$16 sps:$4 sm:$0xff]  }
  0x82   :  { %948 = vmatmul.mubr.bf16.vlgmr.msra.gmra.mxu0 %v1511_v10  ;;  %v1979_v57 = vld [vmem:[%s2669_s3 + $0x18c] ss:$16 sps:$4 sm:$0xff]   ;;  %v1974_v58 = vld [vmem:[%s2669_s3 + $0x180] ss:$16 sps:$4 sm:$0xff]   ;;  %v1977_v59 = vld [vmem:[%s2669_s3 + $0x188] ss:$16 sps:$4 sm:$0xff]  }
  0x83   :  { %989 = vmatmul.mubr.bf16.vlgmr.msra.gmra.mxu1 %v1513_v11  ;;  %1408 = vmatpush1.bf16.msra.mxu0 %v1908_v12  ;;  %v1982_v60 = vld [vmem:[%s2669_s3 + $0x164] ss:$16 sps:$4 sm:$0xff]   ;;  %v1985_v61 = vld [vmem:[%s2669_s3 + $0x16c] ss:$16 sps:$4 sm:$0xff]   ;;  %v1980_v62 = vld [vmem:[%s2669_s3 + $0x160] ss:$16 sps:$4 sm:$0xff]  }
  0x84   :  { %1449 = vmatpush1.bf16.msra.mxu1 %v1911_v14  ;;  %1409 = vmatprep.subr.bf16.mxu0 %v1916_v16  ;;  %v1983_v63 = vld [vmem:[%s2669_s3 + $0x168] ss:$16 sps:$4 sm:$0xff]   ;;  %v1988_v0 = vld [vmem:[%s2669_s3 + $0x144] ss:$16 sps:$4 sm:$0xff]   ;;  %v1991_v1 = vld [vmem:[%s2669_s3 + $0x14c] ss:$16 sps:$4 sm:$0xff]  }
  0x85   :  { %1450 = vmatprep.subr.bf16.mxu1 %v1919_v17  ;;  %v1986_v2 = vld [vmem:[%s2669_s3 + $0x140] ss:$16 sps:$4 sm:$0xff]   ;;  %v1989_v3 = vld [vmem:[%s2669_s3 + $0x148] ss:$16 sps:$4 sm:$0xff]   ;;  %v1994_v4 = vld [vmem:[%s2669_s3 + $0x124] ss:$16 sps:$4 sm:$0xff]  }
  0x86   :  { %v1997_v5 = vld [vmem:[%s2669_s3 + $0x12c] ss:$16 sps:$4 sm:$0xff]   ;;  %v1992_v6 = vld [vmem:[%s2669_s3 + $0x120] ss:$16 sps:$4 sm:$0xff]   ;;  %v1995_v7 = vld [vmem:[%s2669_s3 + $0x128] ss:$16 sps:$4 sm:$0xff]  }
  0x87   :  { %1410 = vmatpush1.bf16.msra.mxu0 %v1914_v18  ;;  %v2000_v8 = vld [vmem:[%s2669_s3 + $0x104] ss:$16 sps:$4 sm:$0xff]   ;;  %v2003_v9 = vld [vmem:[%s2669_s3 + $0x10c] ss:$16 sps:$4 sm:$0xff]   ;;  %v1998_v10 = vld [vmem:[%s2669_s3 + $0x100] ss:$16 sps:$4 sm:$0xff]  }
  0x88   :  { %1451 = vmatpush1.bf16.msra.mxu1 %v1917_v19  ;;  %1411 = vmatprep.subr.bf16.mxu0 %v1922_v20  ;;  %v2001_v11 = vld [vmem:[%s2669_s3 + $0x108] ss:$16 sps:$4 sm:$0xff]   ;;  %v155_v20 = vlaneseq  ;;  %s1499_s25 = sshll.u32 %s2026_s24, 4  ;;  %s1500_s25 = int_to_ptr.vmem [resolvable:$true] %s1499_s25 }
  0x89   :  { %1452 = vmatprep.subr.bf16.mxu1 %v1925_v21  ;;  %p2009_p1 = scmp.lt.s32.totalorder %s1500_s25, %s1500_s25 }
  0x8a   :  { %v156_v21 = vshrl.u32 %v155_v20, 7 }
  0x8b   :  { %1412 = vmatpush1.bf16.msra.mxu0 %v1920_v22 }
  0x8c   :  { %1453 = vmatpush1.bf16.msra.mxu1 %v1923_v23  ;;  %1413 = vmatprep.subr.bf16.mxu0 %v1928_v24  ;;  %v157_v22 = vsub.s32 0, %v156_v21  ;;  %v153_v23 = vld [vmem:[%s2668_s2] sm:$0x3]  ;;  %v161_v24 = vsub.s32 1, %v156_v21 }
  0x8d   :  { %1454 = vmatprep.subr.bf16.mxu1 %v1931_v25 }
  0x8e   :  { %v158_v25 = vrot.slane %v153_v23, %v157_v22 }
  0x8f   :  { %1414 = vmatpush1.bf16.msra.mxu0 %v1926_v26  ;;  %v162_v26 = vrot.slane %v153_v23, %v161_v24 }
  0x90   :  { %1455 = vmatpush1.bf16.msra.mxu1 %v1929_v27  ;;  %1415 = vmatprep.subr.bf16.mxu0 %v1934_v28 }
  0x91   :  { %1456 = vmatprep.subr.bf16.mxu1 %v1937_v29 }
  0x93   :  { %1416 = vmatpush1.bf16.msra.mxu0 %v1932_v30 }
  0x94   :  { %1457 = vmatpush1.bf16.msra.mxu1 %v1935_v31  ;;  %1417 = vmatprep.subr.bf16.mxu0 %v1940_v32 }
  0x95   :  { %1458 = vmatprep.subr.bf16.mxu1 %v1943_v33 }
  0x97   :  { %1418 = vmatpush1.bf16.msra.mxu0 %v1938_v34 }
  0x98   :  { %1459 = vmatpush1.bf16.msra.mxu1 %v1941_v35  ;;  %1419 = vmatprep.subr.bf16.mxu0 %v1946_v36 }
  0x99   :  { %1460 = vmatprep.subr.bf16.mxu1 %v1949_v37 }
  0x9b   :  { %1420 = vmatpush1.bf16.msra.mxu0 %v1944_v38 }
  0x9c   :  { %1461 = vmatpush1.bf16.msra.mxu1 %v1947_v39  ;;  %1421 = vmatprep.subr.bf16.mxu0 %v1952_v40 }
  0x9d   :  { %1462 = vmatprep.subr.bf16.mxu1 %v1955_v41 }
  0x9f   :  { %1422 = vmatpush1.bf16.msra.mxu0 %v1950_v42 }
  0xa0   :  { %1463 = vmatpush1.bf16.msra.mxu1 %v1953_v43  ;;  %1423 = vmatprep.subr.bf16.mxu0 %v1958_v44 }
  0xa1   :  { %1464 = vmatprep.subr.bf16.mxu1 %v1961_v45 }
  0xa3   :  { %1424 = vmatpush2.bf16.msra.mxu0 %v1956_v46 }
  0xa4   :  { %1465 = vmatpush2.bf16.msra.mxu1 %v1959_v47  ;;  %1425 = vmatprep.subr.bf16.mxu0 %v1964_v48  ;;  %v1077_v47 = vsub.s32 2, %v156_v21  ;;  %v1065_v48 = vld [vmem:[%s2670_s4] sm:$0xf]  ;;  %s2004_s4 = scalar_lea.vmem %s1500_s25, 512 }
  0xa5   :  { %1466 = vmatprep.subr.bf16.mxu1 %v1967_v49  ;;  %v1081_v49 = vsub.s32 3, %v156_v21  ;;  %p2005_p0 = scmp.ne.s32.totalorder %s1500_s25, %s2004_s4  ;;  %p2010_p2 = scmp.lt.s32.totalorder %s2004_s4, %s2004_s4 }
  0xa7   :  { %1426 = vmatpush2.bf16.msra.mxu0 %v1962_v50  ;;  %v1070_v50 = vrot.slane %v1065_v48, %v157_v22  ;;  %p2011_p3 = por %p2010_p2, %p2009_p1 }
  0xa8   :  { %1467 = vmatpush2.bf16.msra.mxu1 %v1965_v51  ;;  %1427 = vmatprep.subr.bf16.mxu0 %v1970_v52  ;;  %v1078_v51 = vrot.slane %v1065_v48, %v1077_v47  ;;  %v1074_v52 = vrot.slane %v1065_v48, %v161_v24 }
  0xa9   :  { %1468 = vmatprep.subr.bf16.mxu1 %v1973_v53  ;;  %v1082_v53 = vrot.slane %v1065_v48, %v1081_v49  ;;  %p2012_p4 = pnand %p2011_p3, %p2005_p0 }
  0xab   :  { %1428 = vmatpush2.bf16.msra.mxu0 %v1968_v54 }
  0xac   :  { %1469 = vmatpush2.bf16.msra.mxu1 %v1971_v55  ;;  %1429 = vmatprep.subr.bf16.mxu0 %v1976_v56 }
  0xad   :  { %1470 = vmatprep.subr.bf16.mxu1 %v1979_v57 }
  0xaf   :  { %1430 = vmatpush2.bf16.msra.mxu0 %v1974_v58 }
  0xb0   :  { %1471 = vmatpush2.bf16.msra.mxu1 %v1977_v59  ;;  %1431 = vmatprep.subr.bf16.mxu0 %v1982_v60 }
  0xb1   :  { %1472 = vmatprep.subr.bf16.mxu1 %v1985_v61 }
  0xb3   :  { %1432 = vmatpush2.bf16.msra.mxu0 %v1980_v62 }
  0xb4   :  { %1473 = vmatpush2.bf16.msra.mxu1 %v1983_v63  ;;  %1433 = vmatprep.subr.bf16.mxu0 %v1988_v0 }
  0xb5   :  { %1474 = vmatprep.subr.bf16.mxu1 %v1991_v1 }
  0xb7   :  { %1434 = vmatpush2.bf16.msra.mxu0 %v1986_v2 }
  0xb8   :  { %1475 = vmatpush2.bf16.msra.mxu1 %v1989_v3  ;;  %1435 = vmatprep.subr.bf16.mxu0 %v1994_v4 }
  0xb9   :  { %1476 = vmatprep.subr.bf16.mxu1 %v1997_v5 }
  0xbb   :  { %1436 = vmatpush2.bf16.msra.mxu0 %v1992_v6 }
  0xbc   :  { %1477 = vmatpush2.bf16.msra.mxu1 %v1995_v7  ;;  %1437 = vmatprep.subr.bf16.mxu0 %v2000_v8 }
  0xbd   :  { %1478 = vmatprep.subr.bf16.mxu1 %v2003_v9 }
  0xbf   :  { %1438 = vmatpush2.bf16.msra.mxu0 %v1998_v10 }
  0xc0   :  { %1479 = vmatpush2.bf16.msra.mxu1 %v2001_v11 }
 0x102   :  { %v867_v12 = vpop.f32.mrf.mxu0 }
 0x103   :  { %v908_v13 = vpop.f32.mrf.mxu1  ;;  %v868_v27 = vadd.f32 %v867_v12, %v158_v25 }
 0x104   :  { %v869_v14 = vpop.f32.mrf.mxu0 }
 0x105   :  { %v910_v15 = vpop.f32.mrf.mxu1  ;;  %v870_v28 = vadd.f32 %v869_v14, %v162_v26  ;;  %v909_v29 = vadd.f32 %v908_v13, %v868_v27 }
 0x106   :  { %v871_v16 = vpop.f32.mrf.mxu0 }
 0x107   :  { %v912_v17 = vpop.f32.mrf.mxu1  ;;  %v911_v32 = vadd.f32 %v910_v15, %v870_v28 }
 0x108   :  { %v872_v18 = vpop.f32.mrf.mxu0 }
 0x109   :  { %v913_v19 = vpop.f32.mrf.mxu1 }
 0x142   :  { %v949_v30 = vpop.f32.mrf.mxu0 }
 0x143   :  { %v990_v31 = vpop.f32.mrf.mxu1  ;;  %v950_v33 = vadd.f32 %v949_v30, %v909_v29 }
 0x144   :  { %v951_v34 = vpop.f32.mrf.mxu0 }
 0x145   :  { %v992_v35 = vpop.f32.mrf.mxu1  ;;  %v991_v36 = vadd.f32 %v990_v31, %v950_v33  ;;  %v952_v37 = vadd.f32 %v951_v34, %v911_v32 }
 0x146   :  { %v953_v38 = vpop.f32.mrf.mxu0 }
 0x147   :  { %v994_v39 = vpop.f32.mrf.mxu1  ;;  %v993_v40 = vadd.f32 %v992_v35, %v952_v37  ;;  %v997_v41 = vmax.f32 %v991_v36, 0.0 }
 0x148   :  { %v954_v42 = vpop.f32.mrf.mxu0 }
 0x149   :  { %v995_v43 = vpop.f32.mrf.mxu1  ;;  %v998_v44 = vmax.f32 %v993_v40, 0.0  ;;  %v999_v46 = vpack.c.bf16 %v997_v41, %v997_v41 }
 0x14b   :  { %v1000_v45 = vpack.c.bf16 %v998_v44, %v998_v44 }
 0x14d   :  { %1439 = vmatprep.mubr.bf16.mxu0 %v1000_v45  ;;  %1480 = vmatprep.mubr.bf16.mxu1 %v1000_v45 }
 0x14e   :  { %1440 = vmatmul.mubr.bf16.vlgmr.msra.gmra.mxu0 %v999_v46  ;;  %1481 = vmatmul.mubr.bf16.vlgmr.msra.gmra.mxu1 %v999_v46 }
 0x20e   :  { %v1441_v54 = vpop.f32.mrf.mxu0  ;;  %v1482_v55 = vpop.f32.mrf.mxu1 }
 0x20f   :  { %v1442_v56 = vadd.f32 %v1441_v54, %v1070_v50  ;;  %v1483_v57 = vadd.f32 %v1482_v55, %v1078_v51 }
 0x210   :  { %v1443_v58 = vpop.f32.mrf.mxu0  ;;  %v1484_v59 = vpop.f32.mrf.mxu1 }
 0x211   :  { %1489 = vst [vmem:[#allocation2] sm:$0xff] %v1442_v56  ;;  %1491 = vst [vmem:[#allocation2 + $0x10] sm:$0xff] %v1483_v57  ;;  %v1444_v60 = vadd.f32 %v1443_v58, %v1074_v52  ;;  %v1485_v61 = vadd.f32 %v1484_v59, %v1082_v53 }
 0x212   :  { %v1445_v62 = vpop.f32.mrf.mxu0  ;;  %v1486_v63 = vpop.f32.mrf.mxu1 }
 0x213   :  { %1490 = vst [vmem:[#allocation2 + $0x8] sm:$0xff] %v1444_v60  ;;  %1492 = vst [vmem:[#allocation2 + $0x18] sm:$0xff] %v1485_v61 }
 0x214   :  { %v1446_v0 = vpop.f32.mrf.mxu0  ;;  %v1487_v1 = vpop.f32.mrf.mxu1 }
 0x215   :  { %2015 = shalt.err (!%p2012_p4)
}
 0x216   :  { %1502 = dma.vmem_to_hbm [thread:$0]  %s1500_s25, 512, %s2671_s5, [#allocation3]  }
 0x217   :  { %2024 = dma.done.wait [#allocation3], 512  }
 0x218   :  { %2025 = vsyncadd [#allocation3], 4294966784 }
 0x219   :  { %1506 = vsyncpa [#allocation3], 1 }

</bundles_post_ra>
